<compile_context>
chip_gen: v7x
topology: tpu7x:2x2x1
jax: 0.10.0
libtpu: 0.0.40
codegen_flags: <defaults>
</compile_context>

<pallas_src>
import jax
import jax.numpy as jnp
from jax.experimental import pallas as pl
from jax.experimental.pallas import tpu as pltpu

_LANES = 128


def _pe_add_kernel(x_ref, pe_ref, o_ref):
    # x_ref : (TR, TC) tile of input rows (one row = one flattened batch element).
    # pe_ref: (1, TC)  positional-encoding chunk, broadcast over the sublane axis.
    # Eval-mode dropout is the identity, so the fused op is just the add.
    o_ref[...] = x_ref[...] + pe_ref[...]


def make_positional_encoding_table(num_hiddens: int, max_len: int = 1000,
                                   dtype=jnp.float32) -> jax.Array:
    """Builds P[0] of shape (max_len, num_hiddens), matching the PyTorch code."""
    position = jnp.arange(max_len, dtype=jnp.float32)[:, None]                 # (L, 1)
    freqs = jnp.power(
        10000.0,
        jnp.arange(0, num_hiddens, 2, dtype=jnp.float32) / num_hiddens)        # (ceil(D/2),)
    angles = position / freqs                                                  # (L, ceil(D/2))
    n_sin = (num_hiddens + 1) // 2
    n_cos = num_hiddens // 2
    pe = jnp.zeros((max_len, num_hiddens), jnp.float32)
    pe = pe.at[:, 0::2].set(jnp.sin(angles[:, :n_sin]))
    pe = pe.at[:, 1::2].set(jnp.cos(angles[:, :n_cos]))
    return pe.astype(dtype)


def _sublane_multiple(dtype) -> int:
    # Sub-32-bit dtypes pack along sublanes: native row tile is 8 / 16 / 32.
    return {4: 8, 2: 16, 1: 32}.get(jnp.dtype(dtype).itemsize, 8)


def _round_up(x: int, m: int) -> int:
    return ((x + m - 1) // m) * m


def _scoped_vmem_limit_bytes() -> int:
    """Per-generation scoped-VMEM budget (leaves headroom for Mosaic scratch)."""
    cap = 64 * 1024 * 1024  # conservative default: v7x physical VMEM per TC
    try:
        info = pltpu.get_tpu_info()
        cap = int(getattr(info, "vmem_capacity_bytes", cap)) or cap
    except Exception:
        pass
    # v7x (64 MiB physical) -> 48 MiB scoped; v5e/v6e (128 MiB) -> 64 MiB scoped.
    return int(min(cap * 3 // 4, 64 * 1024 * 1024))


def _choose_tiles(b: int, row_elems: int, itemsize: int, sub: int,
                  target_bytes: int) -> tuple[int, int]:
    """Pick (tile_rows, tile_cols) for the (b, row_elems) lane-dense view."""
    row_bytes = row_elems * itemsize
    min_rows = b if b < sub else sub

    if min_rows * row_bytes <= target_bytes:
        # Case A: full lane extent fits the budget -> tile only the batch rows.
        tile_cols = row_elems
        cap_rows = max(1, target_bytes // row_bytes)
        if b <= cap_rows:
            tile_rows = b
        else:
            tile_rows = max(sub, (cap_rows // sub) * sub)   # never exceeds cap_rows
    else:
        # Case B: a full-row slab would blow the VMEM budget -> tile lanes too.
        tile_rows = min_rows
        if row_elems % _LANES == 0:
            cap_cols = max(_LANES, target_bytes // (tile_rows * itemsize))
            tile_cols = min(row_elems, max(_LANES, (cap_cols // _LANES) * _LANES))
        else:
            # TODO(synk): seq*hidden not a multiple of 128 *and* too large for a
            # single tile would need a 3-D (b, s, d) tiling over seq; fall back
            # to the full lane extent and rely on the raised vmem_limit_bytes.
            tile_cols = row_elems

    # v7x megacore: never leave a single-step grid when the batch can be split
    # across the two TensorCores (one extra, harmless grid step on v5e/v6e).
    if pl.cdiv(b, tile_rows) * pl.cdiv(row_elems, tile_cols) == 1 and b >= 2 * sub:
        tile_rows = _round_up(pl.cdiv(b, 2), sub)

    return tile_rows, tile_cols


def positional_encoding_forward(x: jax.Array, pe_table: jax.Array, *,
                                _target_tile_bytes: int | None = None) -> jax.Array:
    """Pallas equivalent of PositionalEncoding.forward (eval mode).

    x        : (batch, seq_len, num_hiddens)
    pe_table : (max_len, num_hiddens) with max_len >= seq_len
    """
    b, s, d = x.shape
    row_elems = s * d
    itemsize = jnp.dtype(x.dtype).itemsize
    sub = _sublane_multiple(x.dtype)

    # Lane-dense 2-D views: one row per batch element, last dim = full extent.
    x2 = x.reshape(b, row_elems)
    pe2 = pe_table[:s].astype(x.dtype).reshape(1, row_elems)

    vmem_limit = _scoped_vmem_limit_bytes()
    # ~2 MiB tiles sit in the streaming-add sweet spot and, double-buffered for
    # in + out plus the PE chunk, fit even v5e's 16 MiB *default* scoped VMEM.
    target_bytes = _target_tile_bytes or max(
        512 * 1024, min(2 * 1024 * 1024, vmem_limit // 16))

    tile_rows, tile_cols = _choose_tiles(b, row_elems, itemsize, sub, target_bytes)
    n_row_tiles = pl.cdiv(b, tile_rows)
    n_col_tiles = pl.cdiv(row_elems, tile_cols)

    if n_col_tiles == 1:
        grid = (n_row_tiles,)
        x_index = lambda i: (i, 0)
        pe_index = lambda i: (0, 0)          # constant -> PE stays VMEM-resident
        semantics = ("parallel",)
    else:
        # Lane-chunk axis outermost: the PE chunk is only re-DMA'd when it changes.
        grid = (n_col_tiles, n_row_tiles)
        x_index = lambda j, i: (i, j)
        pe_index = lambda j, i: (0, j)
        semantics = ("parallel", "parallel")

    cost = pl.CostEstimate(
        flops=x.size,                        # one add per element
        transcendentals=0,
        bytes_accessed=2 * x.nbytes + pe2.nbytes,
    )

    def build(single_buffer_pe: bool):
        pe_kwargs = dict(pipeline_mode=pl.Buffered(1)) if single_buffer_pe else {}
        return pl.pallas_call(
            _pe_add_kernel,
            out_shape=jax.ShapeDtypeStruct((b, row_elems), x.dtype),
            grid_spec=pltpu.PrefetchScalarGridSpec(
                num_scalar_prefetch=0,
                grid=grid,
                in_specs=[
                    pl.BlockSpec((tile_rows, tile_cols), x_index),
                    pl.BlockSpec((1, tile_cols), pe_index, **pe_kwargs),
                ],
                out_specs=pl.BlockSpec((tile_rows, tile_cols), x_index),
            ),
            compiler_params=pltpu.CompilerParams(
                dimension_semantics=semantics,
                vmem_limit_bytes=vmem_limit,
            ),
            cost_estimate=cost,
        )

    try:
        # Single-buffer the constant / slowly-varying PE input: only one DMA ever
        # lands per chunk, so a second buffer would just waste VMEM.
        out2 = build(True)(x2, pe2)
    except Exception:
        # Fallback if this Pallas version rejects Buffered(1) single-buffering.
        out2 = build(False)(x2, pe2)

    return out2.reshape(b, s, d)


if __name__ == "__main__":
    key = jax.random.PRNGKey(0)

    # Shapes implied by the module: (batch, seq_len, num_hiddens).
    batch, seq_len, num_hiddens, max_len = 2, 8, 32, 1000
    pe_table = make_positional_encoding_table(num_hiddens, max_len=max_len,
                                              dtype=jnp.float32)

    def reference(v):
        return v + pe_table[: v.shape[1]][None, :, :].astype(v.dtype)

    # 1) Module-sized example (single tile path).
    x = jax.random.normal(key, (batch, seq_len, num_hiddens), dtype=jnp.float32)
    out = jax.block_until_ready(positional_encoding_forward(x, pe_table))
    assert out.shape == x.shape and out.dtype == x.dtype
    assert bool(jnp.allclose(out, reference(x), atol=1e-6, rtol=1e-6))

    # 2) Larger batch: exercises the multi-row-tile / megacore-split path.
    x_b = jax.random.normal(jax.random.PRNGKey(1), (32, seq_len, num_hiddens),
                            dtype=jnp.float32)
    out_b = jax.block_until_ready(positional_encoding_forward(x_b, pe_table))
    assert bool(jnp.allclose(out_b, reference(x_b), atol=1e-6, rtol=1e-6))

    # 3) Artificially tiny VMEM budget: exercises the 2-D lane-tiled path.
    out_c = jax.block_until_ready(
        positional_encoding_forward(x, pe_table, _target_tile_bytes=1024))
    assert bool(jnp.allclose(out_c, reference(x), atol=1e-6, rtol=1e-6))

    print("KERNEL_OK")
</pallas_src>

<mosaic_0001>
module attributes {stable_mosaic.version = 11 : i64} {
  func.func @_pe_add_kernel(%arg0: i32, %arg1: memref<2x256xf32, #tpu.memory_space<vmem>>, %arg2: memref<1x256xf32, #tpu.memory_space<vmem>>, %arg3: memref<2x256xf32, #tpu.memory_space<vmem>>) attributes {dimension_semantics = [#tpu.dimension_semantics<parallel>], iteration_bounds = array<i64: 1>, scalar_prefetch = 0 : i64, scratch_operands = 0 : i64, tpu.core_type = #tpu.core_type<tc>, window_params = [{transform_indices = @transform_0, window_bounds = array<i64: 2, 256>}, {pipeline_mode = #tpu.pipeline_mode<synchronous>, transform_indices = @transform_1, window_bounds = array<i64: 1, 256>}, {transform_indices = @transform_2, window_bounds = array<i64: 2, 256>}]} {
    %c0 = arith.constant 0 : index
    %c0_0 = arith.constant 0 : index
    %0 = vector.load %arg1[%c0, %c0_0] : memref<2x256xf32, #tpu.memory_space<vmem>>, vector<2x256xf32>
    %c0_1 = arith.constant 0 : index
    %c0_2 = arith.constant 0 : index
    %1 = vector.load %arg2[%c0_1, %c0_2] : memref<1x256xf32, #tpu.memory_space<vmem>>, vector<1x256xf32>
    %2 = vector.broadcast %1 : vector<1x256xf32> to vector<2x256xf32>
    %3 = arith.addf %0, %2 : vector<2x256xf32>
    %c0_3 = arith.constant 0 : index
    %c0_4 = arith.constant 0 : index
    %4 = vector.load %arg3[%c0_3, %c0_4] : memref<2x256xf32, #tpu.memory_space<vmem>>, vector<2x256xf32>
    tpu.vector_store %arg3[%c0_3, %c0_4], %3 {strides = array<i32>} : memref<2x256xf32, #tpu.memory_space<vmem>>, vector<2x256xf32>,
    return
  }
  func.func @transform_0(%arg0: i32) -> (i32, i32) {
    %c0_i32 = arith.constant 0 : i32
    %c0_i32_0 = arith.constant 0 : i32
    return %arg0, %c0_i32 : i32, i32
  }
  func.func @transform_1(%arg0: i32) -> (i32, i32) {
    %c0_i32 = arith.constant 0 : i32
    %c0_i32_0 = arith.constant 0 : i32
    %c0_i32_1 = arith.constant 0 : i32
    return %c0_i32, %c0_i32_0 : i32, i32
  }
  func.func @transform_2(%arg0: i32) -> (i32, i32) {
    %c0_i32 = arith.constant 0 : i32
    %c0_i32_0 = arith.constant 0 : i32
    return %arg0, %c0_i32 : i32, i32
  }
}

module attributes {stable_mosaic.version = 11 : i64} {
  func.func @_pe_add_kernel(%arg0: i32, %arg1: memref<2x256xf32, #tpu.memory_space<vmem>>, %arg2: memref<1x256xf32, #tpu.memory_space<vmem>>, %arg3: memref<2x256xf32, #tpu.memory_space<vmem>>) attributes {dimension_semantics = [#tpu.dimension_semantics<parallel>], iteration_bounds = array<i64: 1>, scalar_prefetch = 0 : i64, scratch_operands = 0 : i64, tpu.core_type = #tpu.core_type<tc>, window_params = [{transform_indices = @transform_0, window_bounds = array<i64: 2, 256>}, {pipeline_mode = #tpu.pipeline_mode<synchronous>, transform_indices = @transform_1, window_bounds = array<i64: 1, 256>}, {transform_indices = @transform_2, window_bounds = array<i64: 2, 256>}]} {
    %c0 = arith.constant 0 : index
    %c0_0 = arith.constant 0 : index
    %0 = vector.load %arg1[%c0, %c0_0] : memref<2x256xf32, #tpu.memory_space<vmem>>, vector<2x256xf32>
    %c0_1 = arith.constant 0 : index
    %c0_2 = arith.constant 0 : index
    %1 = vector.load %arg2[%c0_1, %c0_2] : memref<1x256xf32, #tpu.memory_space<vmem>>, vector<1x256xf32>
    %2 = vector.broadcast %1 : vector<1x256xf32> to vector<2x256xf32>
    %3 = arith.addf %0, %2 : vector<2x256xf32>
    %c0_3 = arith.constant 0 : index
    %c0_4 = arith.constant 0 : index
    %4 = vector.load %arg3[%c0_3, %c0_4] : memref<2x256xf32, #tpu.memory_space<vmem>>, vector<2x256xf32>
    tpu.vector_store %arg3[%c0_3, %c0_4], %3 {strides = array<i32>} : memref<2x256xf32, #tpu.memory_space<vmem>>, vector<2x256xf32>,
    return
  }
  func.func @transform_0(%arg0: i32) -> (i32, i32) {
    %c0_i32 = arith.constant 0 : i32
    %c0_i32_0 = arith.constant 0 : i32
    return %arg0, %c0_i32 : i32, i32
  }
  func.func @transform_1(%arg0: i32) -> (i32, i32) {
    %c0_i32 = arith.constant 0 : i32
    %c0_i32_0 = arith.constant 0 : i32
    %c0_i32_1 = arith.constant 0 : i32
    return %c0_i32, %c0_i32_0 : i32, i32
  }
  func.func @transform_2(%arg0: i32) -> (i32, i32) {
    %c0_i32 = arith.constant 0 : i32
    %c0_i32_0 = arith.constant 0 : i32
    return %arg0, %c0_i32 : i32, i32
  }
}

</mosaic_0001>

<bundles_post_ra>
// kernel: tpu_custom_call.1
= control target key start
LH: loop header
LB: loop body
LE: loop exit
PB: predicated region body
PF: predicated region fallthrough
CT: control target
= control target key end

     0   :  { %7 = vsyncpa [#allocation3], 0  ;;  %s157_s0 = inlined_call_operand.hbm [shape: f32[2,256], index: 0, kind: input, shape index: {}]   ;;  %s158_s1 = inlined_call_operand.vmem [shape: f32[1,256], index: 1, kind: input, shape index: {}]   ;;  %s159_s2 = inlined_call_operand.hbm [shape: f32[2,256], index: 2, kind: output, shape index: {}]  }
   0x1   :  { %8 = vsyncpa [#allocation4], 0  ;;  %s112_s9 = smov [#allocation2]   ;;  %s64_s13 = scalar_lea.hbm %s157_s0, 64 }
   0x2   :  { %s15_s10 = sshll.u32 %s112_s9, 4  ;;  %p65_p0 = scmp.ne.s32.totalorder %s157_s0, %s64_s13  ;;  %s16_s10 = int_to_ptr.vmem [resolvable:$true] %s15_s10 }
   0x3   :  { %p68_p1 = scmp.lt.u32.totalorder %s64_s13, %s157_s0 }
   0x5   :  { %p70_p2 = pnand %p68_p1, %p65_p0 }
   0x7   :  { %73 = shalt.err (!%p70_p2)
}
   0x8   :  { %s74_s18 = scalar_lea.vmem %s16_s10, 64  ;;  %p79_p4 = scmp.lt.s32.totalorder %s16_s10, %s16_s10 }
   0x9   :  { %p75_p3 = scmp.ne.s32.totalorder %s16_s10, %s74_s18  ;;  %p80_p5 = scmp.lt.s32.totalorder %s74_s18, %s74_s18 }
   0xb   :  { %p81_p6 = por %p80_p5, %p79_p4 }
   0xd   :  { %p82_p7 = pnand %p81_p6, %p75_p3 }
   0xf   :  { %85 = shalt.err (!%p82_p7)
}
  0x10   :  { %18 = dma.hbm_to_vmem [thread:$0]  %s157_s0, 64, %s16_s10, [#allocation3]  }
  0x11   :  { %108 = dma.done.wait [#allocation3], 64  }
  0x12   :  { %109 = vsyncadd [#allocation3], 4294967232  ;;  %v27_v0 = vlaneseq  ;;  %v113_v1 = vmov 1983009808   ;;  %v25_v7 = vld [vmem:[%s158_s1] sm:$0x3] }
  0x13   :  { %v37_v2 = vunpack.c.l.s4 %v113_v1  ;;  %v24_v12 = vld [vmem:[#allocation2] sm:$0xf]  ;;  %s114_s23 = smov [#allocation5]  }
  0x14   :  { %v28_v3 = vshrl.u32 %v27_v0, 7  ;;  %s52_s0 = sshll.u32 %s114_s23, 4  ;;  %s53_s0 = int_to_ptr.vmem [resolvable:$true] %s52_s0 }
  0x15   :  { %v38_v6 = vunpack.c.0.s8 %v37_v2  ;;  %s86_s24 = scalar_lea.vmem %s53_s0, 64  ;;  %p91_p9 = scmp.lt.s32.totalorder %s53_s0, %s53_s0 }
  0x16   :  { %v29_v4 = vsub.s32 0, %v28_v3  ;;  %v33_v5 = vsub.s32 1, %v28_v3  ;;  %p87_p8 = scmp.ne.s32.totalorder %s53_s0, %s86_s24  ;;  %p92_p10 = scmp.lt.s32.totalorder %s86_s24, %s86_s24 }
  0x17   :  { %v41_v10 = vsub.s32 %v38_v6, %v28_v3 }
  0x18   :  { %v30_v8 = vrot.slane %v25_v7, %v29_v4  ;;  %v34_v9 = vrot.slane %v25_v7, %v33_v5  ;;  %p93_p11 = por %p92_p10, %p91_p9 }
  0x1a   :  { %v35_v11 = vcombine.low %v30_v8, %v34_v9  ;;  %p94_p12 = pnand %p93_p11, %p87_p8 }
  0x1c   :  { %v42_v13 = vrot.slane %v35_v11, %v41_v10 }
  0x1e   :  { %v44_v14 = vadd.f32 %v42_v13, %v24_v12 }
  0x20   :  { %45 = vst [vmem:[#allocation5] sm:$0xf] %v44_v14 }
  0x21   :  { %97 = shalt.err (!%p94_p12)
}
  0x22   :  { %s98_s26 = scalar_lea.hbm %s159_s2, 64 }
  0x23   :  { %p99_p13 = scmp.ne.s32.totalorder %s159_s2, %s98_s26  ;;  %p102_p0 = scmp.lt.u32.totalorder %s98_s26, %s159_s2 }
  0x25   :  { %p104_p1 = pnand %p102_p0, %p99_p13 }
  0x27   :  { %107 = shalt.err (!%p104_p1)
}
  0x28   :  { %55 = dma.vmem_to_hbm [thread:$0]  %s53_s0, 64, %s159_s2, [#allocation4]  }
  0x29   :  { %110 = dma.done.wait [#allocation4], 64  }
  0x2a   :  { %111 = vsyncadd [#allocation4], 4294967232 }
  0x2b   :  { %59 = vsyncpa [#allocation3], 1 }
  0x2c   :  { %60 = vsyncpa [#allocation4], 1 }

// kernel: tpu_custom_call.1
= control target key start
LH: loop header
LB: loop body
LE: loop exit
PB: predicated region body
PF: predicated region fallthrough
CT: control target
= control target key end

     0   :  { %7 = vsyncpa [#allocation3], 0  ;;  %s157_s0 = inlined_call_operand.hbm [shape: f32[2,256], index: 0, kind: input, shape index: {}]   ;;  %s158_s1 = inlined_call_operand.vmem [shape: f32[1,256], index: 1, kind: input, shape index: {}]   ;;  %s159_s2 = inlined_call_operand.hbm [shape: f32[2,256], index: 2, kind: output, shape index: {}]  }
   0x1   :  { %8 = vsyncpa [#allocation4], 0  ;;  %s112_s9 = smov [#allocation2]   ;;  %s64_s13 = scalar_lea.hbm %s157_s0, 64 }
   0x2   :  { %s15_s10 = sshll.u32 %s112_s9, 4  ;;  %p65_p0 = scmp.ne.s32.totalorder %s157_s0, %s64_s13  ;;  %s16_s10 = int_to_ptr.vmem [resolvable:$true] %s15_s10 }
   0x3   :  { %p68_p1 = scmp.lt.u32.totalorder %s64_s13, %s157_s0 }
   0x5   :  { %p70_p2 = pnand %p68_p1, %p65_p0 }
   0x7   :  { %73 = shalt.err (!%p70_p2)
}
   0x8   :  { %s74_s18 = scalar_lea.vmem %s16_s10, 64  ;;  %p79_p4 = scmp.lt.s32.totalorder %s16_s10, %s16_s10 }
   0x9   :  { %p75_p3 = scmp.ne.s32.totalorder %s16_s10, %s74_s18  ;;  %p80_p5 = scmp.lt.s32.totalorder %s74_s18, %s74_s18 }
   0xb   :  { %p81_p6 = por %p80_p5, %p79_p4 }
   0xd   :  { %p82_p7 = pnand %p81_p6, %p75_p3 }
   0xf   :  { %85 = shalt.err (!%p82_p7)
}
  0x10   :  { %18 = dma.hbm_to_vmem [thread:$0]  %s157_s0, 64, %s16_s10, [#allocation3]  }
  0x11   :  { %108 = dma.done.wait [#allocation3], 64  }
  0x12   :  { %109 = vsyncadd [#allocation3], 4294967232  ;;  %v27_v0 = vlaneseq  ;;  %v113_v1 = vmov 1983009808   ;;  %v25_v7 = vld [vmem:[%s158_s1] sm:$0x3] }
  0x13   :  { %v37_v2 = vunpack.c.l.s4 %v113_v1  ;;  %v24_v12 = vld [vmem:[#allocation2] sm:$0xf]  ;;  %s114_s23 = smov [#allocation5]  }
  0x14   :  { %v28_v3 = vshrl.u32 %v27_v0, 7  ;;  %s52_s0 = sshll.u32 %s114_s23, 4  ;;  %s53_s0 = int_to_ptr.vmem [resolvable:$true] %s52_s0 }
  0x15   :  { %v38_v6 = vunpack.c.0.s8 %v37_v2  ;;  %s86_s24 = scalar_lea.vmem %s53_s0, 64  ;;  %p91_p9 = scmp.lt.s32.totalorder %s53_s0, %s53_s0 }
  0x16   :  { %v29_v4 = vsub.s32 0, %v28_v3  ;;  %v33_v5 = vsub.s32 1, %v28_v3  ;;  %p87_p8 = scmp.ne.s32.totalorder %s53_s0, %s86_s24  ;;  %p92_p10 = scmp.lt.s32.totalorder %s86_s24, %s86_s24 }
  0x17   :  { %v41_v10 = vsub.s32 %v38_v6, %v28_v3 }
  0x18   :  { %v30_v8 = vrot.slane %v25_v7, %v29_v4  ;;  %v34_v9 = vrot.slane %v25_v7, %v33_v5  ;;  %p93_p11 = por %p92_p10, %p91_p9 }
  0x1a   :  { %v35_v11 = vcombine.low %v30_v8, %v34_v9  ;;  %p94_p12 = pnand %p93_p11, %p87_p8 }
  0x1c   :  { %v42_v13 = vrot.slane %v35_v11, %v41_v10 }
  0x1e   :  { %v44_v14 = vadd.f32 %v42_v13, %v24_v12 }
  0x20   :  { %45 = vst [vmem:[#allocation5] sm:$0xf] %v44_v14 }
  0x21   :  { %97 = shalt.err (!%p94_p12)
}
  0x22   :  { %s98_s26 = scalar_lea.hbm %s159_s2, 64 }
  0x23   :  { %p99_p13 = scmp.ne.s32.totalorder %s159_s2, %s98_s26  ;;  %p102_p0 = scmp.lt.u32.totalorder %s98_s26, %s159_s2 }
  0x25   :  { %p104_p1 = pnand %p102_p0, %p99_p13 }
  0x27   :  { %107 = shalt.err (!%p104_p1)
}
  0x28   :  { %55 = dma.vmem_to_hbm [thread:$0]  %s53_s0, 64, %s159_s2, [#allocation4]  }
  0x29   :  { %110 = dma.done.wait [#allocation4], 64  }
  0x2a   :  { %111 = vsyncadd [#allocation4], 4294967232 }
  0x2b   :  { %59 = vsyncpa [#allocation3], 1 }
  0x2c   :  { %60 = vsyncpa [#allocation4], 1 }

</bundles_post_ra>
